<compile_context>
chip_gen: v6e
topology: v6e:2x2x1
jax: 0.10.0
libtpu: 0.0.40
codegen_flags: <defaults>
</compile_context>

<pallas_src>
import jax
import jax.numpy as jnp
from jax.experimental import pallas as pl
from jax.experimental.pallas import tpu as pltpu


def _combine_kernel(kpts_ref, mask_ref, wk_ref, wm_ref, b_ref, out_ref):
    # kpts_ref: (1, k, T)   mask_ref: (1, 1, T)
    # wk_ref:   (k, k)      wm_ref:   (k, 1)     b_ref: (k, 1)
    # out_ref:  (1, k, T)
    kpts = kpts_ref[0]                      # (k, T)
    mask = mask_ref[0]                      # (1, T)
    # 1x1 conv over the split weight: channel 0 of the original conv input is
    # the mask channel (concat order [mask, kpts]), channels 1..k are kpts.
    alpha = jnp.dot(wk_ref[...], kpts, preferred_element_type=jnp.float32)
    alpha = alpha + wm_ref[...] * mask + b_ref[...]       # (k, T), f32
    # meta_heatmap = mask * alpha + kpts   (beta == 1)
    out_ref[0] = (mask * alpha + kpts).astype(out_ref.dtype)


def _choose_pixel_tile(HW, N, cap):
    """Pick the pixel-axis tile T (lane dim).  Prefers a multiple-of-128
    divisor of HW so no padding / partial blocks are ever needed."""
    cap = max(128, (int(cap) // 128) * 128)
    if HW % 128 == 0:
        # Largest multiple-of-128 divisor of HW that is <= cap (128 always works).
        limit = cap // 128
        m = HW // 128
        best = 1
        d = 1
        while d * d <= m:
            if m % d == 0:
                if d <= limit and d > best:
                    best = d
                q = m // d
                if q <= limit and q > best:
                    best = q
            d += 1
        T = 128 * best
        # Keep at least 2 grid steps so v7x megacore has work to split.
        while N * (HW // T) < 2 and T % 256 == 0:
            T //= 2
        return T
    # Ragged pixel count (rare for real heatmap sizes).
    if HW <= cap:
        return HW          # single full-extent block (block dim == array dim is allowed)
    return cap             # partial last block; Pallas masks out-of-bounds stores


def combinetworks_v1_forward(kpts_heatmaps, mask_heatmap, conv_w, conv_b, *, tile=16384):
    """kpts_heatmaps: [N, k, H, W], mask_heatmap: [N, 1, H, W]
       conv_w: [k, k+1, 1, 1], conv_b: [k]  ->  meta_heatmaps: [N, k, H, W]"""
    N, k, H, W = kpts_heatmaps.shape
    HW = H * W

    T = _choose_pixel_tile(HW, N, tile)
    num_blocks = pl.cdiv(HW, T)

    # Free, contiguous reshapes only — no pad, no transpose, no post-slice.
    kpts_f = kpts_heatmaps.reshape(N, k, HW)
    mask_f = mask_heatmap.reshape(N, 1, HW)

    # Split the 1x1-conv weight so the kernel never needs the concatenated input.
    w = conv_w.reshape(k, k + 1)            # [k, k+1]  (input-channel order: [mask, kpts])
    w_mask = w[:, 0:1]                      # [k, 1]
    w_kpts = w[:, 1:]                       # [k, k]
    b = conv_b.reshape(k, 1)                # [k, 1]

    grid = (N, num_blocks)
    out = pl.pallas_call(
        _combine_kernel,
        out_shape=jax.ShapeDtypeStruct((N, k, HW), kpts_heatmaps.dtype),
        grid=grid,
        in_specs=[
            pl.BlockSpec((1, k, T), lambda n, t: (n, 0, t)),   # kpts
            pl.BlockSpec((1, 1, T), lambda n, t: (n, 0, t)),   # mask
            pl.BlockSpec((k, k), lambda n, t: (0, 0)),         # w_kpts
            pl.BlockSpec((k, 1), lambda n, t: (0, 0)),         # w_mask
            pl.BlockSpec((k, 1), lambda n, t: (0, 0)),         # bias
        ],
        out_specs=pl.BlockSpec((1, k, T), lambda n, t: (n, 0, t)),
        compiler_params=pltpu.CompilerParams(
            dimension_semantics=("parallel", "parallel")),
    )(kpts_f, mask_f, w_kpts, w_mask, b)

    return out.reshape(N, k, H, W)


def _reference(kpts_heatmaps, mask_heatmap, conv_w, conv_b):
    # Pure-JAX reference mirroring the PyTorch forward (1x1 conv + combine).
    combine = jnp.concatenate([mask_heatmap, kpts_heatmaps], axis=1)   # [N, k+1, H, W]
    w = conv_w[:, :, 0, 0]                                             # [k, k+1]
    meta_weight = jnp.einsum("ncHW,kc->nkHW", combine, w) + conv_b[None, :, None, None]
    return mask_heatmap * meta_weight + kpts_heatmaps


if __name__ == "__main__":
    key = jax.random.PRNGKey(0)
    k_kpts, k_mask, k_w, k_b = jax.random.split(key, 4)

    N, k, H, W = 2, 17, 16, 16           # 17 keypoints (COCO-like), combine_channels = 18
    combine_channels, heatmap_channels = k + 1, k

    kpts_heatmaps = jax.random.normal(k_kpts, (N, k, H, W), dtype=jnp.float32)
    mask_heatmap = jax.random.normal(k_mask, (N, 1, H, W), dtype=jnp.float32)

    # Deterministic parameter init matching nn.init.uniform_(a=0, b=1).
    conv_w = jax.random.uniform(k_w, (heatmap_channels, combine_channels, 1, 1),
                                dtype=jnp.float32, minval=0.0, maxval=1.0)
    conv_b = jax.random.uniform(k_b, (heatmap_channels,),
                                dtype=jnp.float32, minval=0.0, maxval=1.0)

    out = combinetworks_v1_forward(kpts_heatmaps, mask_heatmap, conv_w, conv_b)
    out = jax.block_until_ready(out)

    ref = _reference(kpts_heatmaps, mask_heatmap, conv_w, conv_b)
    assert out.shape == (N, k, H, W)
    assert jnp.allclose(out, ref, atol=1e-5, rtol=1e-5), "mismatch vs reference"

    print("KERNEL_OK")
</pallas_src>

<mosaic_0001>
module attributes {stable_mosaic.version = 11 : i64} {
  func.func @_combine_kernel(%arg0: i32, %arg1: i32, %arg2: memref<1x17x256xf32, #tpu.memory_space<vmem>>, %arg3: memref<1x1x256xf32, #tpu.memory_space<vmem>>, %arg4: memref<17x17xf32, #tpu.memory_space<vmem>>, %arg5: memref<17x1xf32, #tpu.memory_space<vmem>>, %arg6: memref<17x1xf32, #tpu.memory_space<vmem>>, %arg7: memref<1x17x256xf32, #tpu.memory_space<vmem>>) attributes {dimension_semantics = [#tpu.dimension_semantics<parallel>, #tpu.dimension_semantics<parallel>], iteration_bounds = array<i64: 2, 1>, scalar_prefetch = 0 : i64, scratch_operands = 0 : i64, tpu.core_type = #tpu.core_type<tc>, window_params = [{transform_indices = @transform_0, window_bounds = array<i64: 1, 17, 256>}, {transform_indices = @transform_1, window_bounds = array<i64: 1, 1, 256>}, {pipeline_mode = #tpu.pipeline_mode<synchronous>, transform_indices = @transform_2, window_bounds = array<i64: 17, 17>}, {pipeline_mode = #tpu.pipeline_mode<synchronous>, transform_indices = @transform_3, window_bounds = array<i64: 17, 1>}, {pipeline_mode = #tpu.pipeline_mode<synchronous>, transform_indices = @transform_4, window_bounds = array<i64: 17, 1>}, {transform_indices = @transform_5, window_bounds = array<i64: 1, 17, 256>}]} {
    %c0 = arith.constant 0 : index
    %c0_0 = arith.constant 0 : index
    %c0_1 = arith.constant 0 : index
    %0 = vector.load %arg2[%c0, %c0_0, %c0_1] : memref<1x17x256xf32, #tpu.memory_space<vmem>>, vector<1x17x256xf32>
    %1 = vector.shape_cast %0 : vector<1x17x256xf32> to vector<17x256xf32>
    %c0_2 = arith.constant 0 : index
    %c0_3 = arith.constant 0 : index
    %c0_4 = arith.constant 0 : index
    %2 = vector.load %arg3[%c0_2, %c0_3, %c0_4] : memref<1x1x256xf32, #tpu.memory_space<vmem>>, vector<1x1x256xf32>
    %3 = vector.shape_cast %2 : vector<1x1x256xf32> to vector<1x256xf32>
    %c0_5 = arith.constant 0 : index
    %c0_6 = arith.constant 0 : index
    %4 = vector.load %arg4[%c0_5, %c0_6] : memref<17x17xf32, #tpu.memory_space<vmem>>, vector<17x17xf32>
    %cst = arith.constant dense<0.000000e+00> : vector<17x256xf32>
    %5 = tpu.matmul %4, %1, %cst {dimension_numbers = #tpu.dot_dimension_numbers<[1], [0], [0], [1], [0, 0, 1, 1], [], []>} : vector<17x17xf32>, vector<17x256xf32>, vector<17x256xf32> -> vector<17x256xf32>
    %c0_7 = arith.constant 0 : index
    %c0_8 = arith.constant 0 : index
    %6 = vector.load %arg5[%c0_7, %c0_8] : memref<17x1xf32, #tpu.memory_space<vmem>>, vector<17x1xf32>
    %7 = vector.broadcast %6 : vector<17x1xf32> to vector<17x256xf32>
    %8 = vector.broadcast %3 : vector<1x256xf32> to vector<17x256xf32>
    %9 = arith.mulf %7, %8 : vector<17x256xf32>
    %10 = arith.addf %5, %9 : vector<17x256xf32>
    %c0_9 = arith.constant 0 : index
    %c0_10 = arith.constant 0 : index
    %11 = vector.load %arg6[%c0_9, %c0_10] : memref<17x1xf32, #tpu.memory_space<vmem>>, vector<17x1xf32>
    %12 = vector.broadcast %11 : vector<17x1xf32> to vector<17x256xf32>
    %13 = arith.addf %10, %12 : vector<17x256xf32>
    %14 = vector.broadcast %3 : vector<1x256xf32> to vector<17x256xf32>
    %15 = arith.mulf %14, %13 : vector<17x256xf32>
    %16 = arith.addf %15, %1 : vector<17x256xf32>
    %c0_11 = arith.constant 0 : index
    %c0_12 = arith.constant 0 : index
    %c0_13 = arith.constant 0 : index
    %17 = vector.load %arg7[%c0_11, %c0_12, %c0_13] : memref<1x17x256xf32, #tpu.memory_space<vmem>>, vector<1x17x256xf32>
    %18 = vector.shape_cast %17 : vector<1x17x256xf32> to vector<17x256xf32>
    %19 = vector.shape_cast %16 : vector<17x256xf32> to vector<1x17x256xf32>
    tpu.vector_store %arg7[%c0_11, %c0_12, %c0_13], %19 {strides = array<i32>} : memref<1x17x256xf32, #tpu.memory_space<vmem>>, vector<1x17x256xf32>,
    return
  }
  func.func @transform_0(%arg0: i32, %arg1: i32) -> (i32, i32, i32) {
    %c0_i32 = arith.constant 0 : i32
    %c0_i32_0 = arith.constant 0 : i32
    return %arg0, %c0_i32, %arg1 : i32, i32, i32
  }
  func.func @transform_1(%arg0: i32, %arg1: i32) -> (i32, i32, i32) {
    %c0_i32 = arith.constant 0 : i32
    %c0_i32_0 = arith.constant 0 : i32
    return %arg0, %c0_i32, %arg1 : i32, i32, i32
  }
  func.func @transform_2(%arg0: i32, %arg1: i32) -> (i32, i32) {
    %c0_i32 = arith.constant 0 : i32
    %c0_i32_0 = arith.constant 0 : i32
    %c0_i32_1 = arith.constant 0 : i32
    return %c0_i32, %c0_i32_0 : i32, i32
  }
  func.func @transform_3(%arg0: i32, %arg1: i32) -> (i32, i32) {
    %c0_i32 = arith.constant 0 : i32
    %c0_i32_0 = arith.constant 0 : i32
    %c0_i32_1 = arith.constant 0 : i32
    return %c0_i32, %c0_i32_0 : i32, i32
  }
  func.func @transform_4(%arg0: i32, %arg1: i32) -> (i32, i32) {
    %c0_i32 = arith.constant 0 : i32
    %c0_i32_0 = arith.constant 0 : i32
    %c0_i32_1 = arith.constant 0 : i32
    return %c0_i32, %c0_i32_0 : i32, i32
  }
  func.func @transform_5(%arg0: i32, %arg1: i32) -> (i32, i32, i32) {
    %c0_i32 = arith.constant 0 : i32
    %c0_i32_0 = arith.constant 0 : i32
    return %arg0, %c0_i32, %arg1 : i32, i32, i32
  }
}

</mosaic_0001>

<bundles_post_ra>
// kernel: tpu_custom_call.1
= control target key start
LH: loop header
LB: loop body
LE: loop exit
PB: predicated region body
PF: predicated region fallthrough
CT: control target
= control target key end

     0   :  { %s692_s18 = smov 0   ;;  %s694_s19 = smov 0   ;;  %s788_s0 = inlined_call_operand.vmem [shape: f32[2,17,256], index: 0, kind: input, shape index: {}]   ;;  %s789_s1 = inlined_call_operand.vmem [shape: f32[2,1,256], index: 1, kind: input, shape index: {}]   ;;  %s790_s2 = inlined_call_operand.vmem [shape: f32[17,17], index: 2, kind: input, shape index: {}]   ;;  %s791_s3 = inlined_call_operand.vmem [shape: f32[17,1], index: 3, kind: input, shape index: {}]   ;;  %s792_s4 = inlined_call_operand.vmem [shape: f32[17,1], index: 4, kind: input, shape index: {}]   ;;  %s793_s5 = inlined_call_operand.vmem [shape: f32[2,17,256], index: 5, kind: output, shape index: {}]  }
   0x1   :  { %s696_s20 = smov 0  }
   0x2 LB: > { %s27_s21 = sadd.s32 1, %s654_s19  ;;  %p590_p0 = scmp.ge.s32.totalorder %s658_s20, 1  ;;  %s658_s20 = sphi %s696_s20, %s15_s20   ;;  %s654_s19 = sphi %s694_s19, %s795_s19   ;;  %s650_s18 = sphi %s692_s18, %s794_s18  }
   0x3   : > { %p29_p1 = scmp.ge.s32.totalorder %s27_s21, 2  ;;  %p224_p2 = scmp.lt.s32.totalorder %s658_s20, 3 }
   0x5   : > { %s797_s21 = smov (%p29_p1, %s27_s21), 0  ;;  %p225_p3 = pnand %p590_p0, %p224_p2 }
   0x6   : > { %p269_p4 = scmp.lt.s32.totalorder (!%p225_p3), %s650_s18, 1 }
   0x7   : > { %228 = sbr.rel (%p225_p3) target bundleno = 233 (0xe9), region = 40 }
   0xc   : > { %v660_v0 = vmov 0.0   ;;  %v309_v1 = vld [vmem:[%s791_s3 + $0x10] sm:$0x1]  ;;  %v307_v2 = vld [vmem:[%s791_s3] sm:$0xff]  ;;  %s799_s18 = smov (!%p269_p4, %s650_s18), 1  ;;  %v661_v3 = vmov 0   ;;  %v326_v17 = vlaneseq }
   0xd   : > { %423 = vmatprep.mubr.f32.mxu0 %v660_v0  ;;  %429 = vmatprep.mubr.f32.mxu1 %v660_v0  ;;  %s607_s26 = smul.u32 48, %s799_s18  ;;  %v442_v4 = vld [vmem:[%s792_s4] sm:$0xff]  ;;  %v308_v5 = vld [vmem:[%s791_s3 + $0x8] sm:$0xff]  ;;  %vm352_vm0 = vcmask 1040384   ;;  %vm342_vm1 = vcmask 138240   ;;  %s592_s23 = sshll.u32 %s799_s18, 1 }
   0xe   : > { %635 = vset.pattern.permute.xlu1 %v661_v3  ;;  %634 = vset.pattern.permute.xlu0 %v661_v3  ;;  %v304_v12 = vld [vmem:[%s790_s2] sm:$0xff]  ;;  %v305_v13 = vld [vmem:[%s790_s2 + $0x8] sm:$0xff]  ;;  %v444_v14 = vld [vmem:[%s792_s4 + $0x10] sm:$0x1]  ;;  %v327_v18 = vshrl.u32 %v326_v17, 7  ;;  %s285_s27 = scalar_lea.vmem %s789_s1, %s592_s23 }
   0xf   : > { %322 = vperm.xlu1 %635, %v309_v1   ;;  %312 = vperm.xlu0 %634, %v307_v2   ;;  %s276_s8 = scalar_lea.vmem %s788_s0, %s607_s26  ;;  %v443_v15 = vld [vmem:[%s792_s4 + $0x8] sm:$0xff]  ;;  %v306_v16 = vld [vmem:[%s790_s2 + $0x10] sm:$0x1]  ;;  %v303_v21 = vld [vmem:[%s285_s27] sm:$0x3]  ;;  %s295_s30 = scalar_lea.vmem %s793_s5, %s607_s26 }
  0x10   : > { %v730_v6 = vld [vmem:[%s276_s8 + $0x28] sm:$0x1]  ;;  %v732_v7 = vld [vmem:[%s276_s8 + $0x20] sm:$0x1]  ;;  %v734_v8 = vld [vmem:[%s276_s8 + $0x18] sm:$0xff]  ;;  %v328_v19 = vsub.s32 0, %v327_v18 }
  0x11   : > { %594 = vmatprep.subr.msk.mxu0 %vm352_vm0, %v730_v6  ;;  %601 = vmatprep.subr.msk.mxu1 %vm352_vm0, %v730_v6  ;;  %v738_v9 = vld [vmem:[%s276_s8 + $0x10] sm:$0xff]  ;;  %v742_v10 = vld [vmem:[%s276_s8 + $0x8] sm:$0xff]  ;;  %v297_v11 = vld [vmem:[%s276_s8] sm:$0xff]  ;;  %v332_v22 = vsub.s32 1, %v327_v18 }
  0x12   : > { %595 = vmatpush1.msk.msra.mxu0 %vm352_vm0, %v732_v7  ;;  %604 = vmatpush1.msk.msra.mxu1 %vm352_vm0, %v732_v7  ;;  %v329_v23 = vrot.slane %v303_v21, %v328_v19 }
  0x13   : > { %447 = vperm.xlu1 %635, %v442_v4   ;;  %317 = vperm.xlu0 %634, %v308_v5   ;;  %v333_v24 = vrot.slane %v303_v21, %v332_v22 }
  0x14   : > { %387 = vmatprep.subr.mxu0 %v734_v8  ;;  %602 = vmatprep.subr.mxu1 %v734_v8 }
  0x15   : > { %388 = vmatpush1.msra.mxu0 %v738_v9  ;;  %605 = vmatpush1.msra.mxu1 %v738_v9 }
  0x16   : > { %389 = vmatprep.subr.mxu0 %v742_v10  ;;  %603 = vmatprep.subr.mxu1 %v742_v10 }
  0x17   : > { %390 = vmatpush1.msra.mxu0 %v297_v11  ;;  %606 = vmatpush1.msra.mxu1 %v297_v11 }
  0x18   : > { %596 = vmatmul.mubr.msk.f32.vlgmr.msra.gmra.mxu0 %vm342_vm1, %v304_v12  ;;  %597 = vmatmul.mubr.msk.f32.vlgmr.msra.gmra.mxu1 %vm342_vm1, %v305_v13 }
  0x19   : > { %435 = vmatprep.mubr.f32.mxu1 %v660_v0  ;;  %457 = vperm.xlu1 %635, %v444_v14  }
  0x1a   : > { %452 = vperm.xlu0 %634, %v443_v15  }
  0x1c   : > { %598 = vmatmul.mubr.msk.f32.gmra.mxu1 %vm342_vm1, %v306_v16 }
  0x8a   : > { %v313_v20 = vpop.permute.xlu0 %312  ;;  %v323_v25 = vpop.permute.xlu1 %322 }
  0x8b   : > { %v336_v27 = vmul.f32 %v329_v23, %v313_v20  ;;  %v337_v29 = vmul.f32 %v333_v24, %v313_v20  ;;  %v340_v43 = vmul.f32 %v329_v23, %v323_v25  ;;  %v341_v49 = vmul.f32 %v333_v24, %v323_v25 }
  0x8e   : > { %v318_v26 = vpop.permute.xlu0 %317  ;;  %v448_v33 = vpop.permute.xlu1 %447 }
  0x8f   : > { %v338_v28 = vmul.f32 %v329_v23, %v318_v26  ;;  %v339_v30 = vmul.f32 %v333_v24, %v318_v26 }
  0x94   : > { %v458_v52 = vpop.permute.xlu1 %457 }
  0x95   : > { %v453_v34 = vpop.permute.xlu0 %452 }
  0xd8   : > { %v425_v31 = vpop.f32.mrf.mxu0  ;;  %v431_v32 = vpop.f32.mrf.mxu1 }
  0xd9   : > { %v426_v35 = vadd.f32 %v425_v31, %v336_v27  ;;  %v432_v36 = vadd.f32 %v431_v32, %v338_v28 }
  0xda   : > { %v427_v37 = vpop.f32.mrf.mxu0  ;;  %v433_v38 = vpop.f32.mrf.mxu1 }
  0xdb   : > { %v460_v39 = vadd.f32 %v448_v33, %v426_v35  ;;  %v462_v40 = vadd.f32 %v453_v34, %v432_v36  ;;  %v428_v41 = vadd.f32 %v427_v37, %v337_v29  ;;  %v434_v42 = vadd.f32 %v433_v38, %v339_v30 }
  0xdc   : > { %v437_v44 = vpop.f32.mrf.mxu1 }
  0xdd   : > { %v466_v45 = vmul.f32 %v460_v39, %v329_v23  ;;  %v468_v46 = vmul.f32 %v462_v40, %v329_v23  ;;  %v461_v47 = vadd.f32 %v448_v33, %v428_v41  ;;  %v463_v48 = vadd.f32 %v453_v34, %v434_v42 }
  0xde   : > { %v438_v50 = vadd.f32 %v437_v44, %v340_v43  ;;  %v439_v51 = vpop.f32.mrf.mxu1 }
  0xdf   : > { %v472_v53 = vadd.f32 %v466_v45, %v297_v11  ;;  %v474_v54 = vadd.f32 %v468_v46, %v738_v9  ;;  %v467_v55 = vmul.f32 %v461_v47, %v333_v24  ;;  %v469_v56 = vmul.f32 %v463_v48, %v333_v24 }
  0xe0   : > { %v464_v57 = vadd.f32 %v458_v52, %v438_v50  ;;  %v440_v58 = vadd.f32 %v439_v51, %v341_v49 }
  0xe1   : > { %478 = vst [vmem:[%s295_s30] sm:$0xff] %v472_v53  ;;  %480 = vst [vmem:[%s295_s30 + $0x10] sm:$0xff] %v474_v54  ;;  %v473_v59 = vadd.f32 %v467_v55, %v742_v10  ;;  %v475_v60 = vadd.f32 %v469_v56, %v734_v8 }
  0xe2   : > { %v470_v61 = vmul.f32 %v464_v57, %v329_v23  ;;  %v465_v62 = vadd.f32 %v458_v52, %v440_v58 }
  0xe3   : > { %479 = vst [vmem:[%s295_s30 + $0x8] sm:$0xff] %v473_v59  ;;  %481 = vst [vmem:[%s295_s30 + $0x18] sm:$0xff] %v475_v60 }
  0xe4   : > { %v476_v63 = vadd.f32 %v470_v61, %v732_v7  ;;  %v471_v0 = vmul.f32 %v465_v62, %v333_v24 }
  0xe6   : > { %482 = vst [vmem:[%s295_s30 + $0x20] sm:$0x1] %v476_v63  ;;  %v477_v1 = vadd.f32 %v471_v0, %v730_v6 }
  0xe8   : > { %483 = vst [vmem:[%s295_s30 + $0x28] sm:$0x1] %v477_v1 }
  0xe9 PF: > { %s15_s20 = sadd.s32 1, %s658_s20   ;;  %s794_s18 = smov %s654_s19 }
  0xea   : > { %p12_p5 = scmp.ge.s32.totalorder %s15_s20, 4   ;;  %s795_s19 = smov %s797_s21 }
  0xec   :  { %14 = sbr.rel (!%p12_p5) target bundleno = 2 (0x2), region = 73 }

</bundles_post_ra>
